<compile_context>
chip_gen: v6e
topology: v6e:2x2x1
jax: 0.10.0
libtpu: 0.0.40
codegen_flags: <defaults>
</compile_context>

<pallas_src>
import jax
import jax.numpy as jnp
from jax.experimental import pallas as pl
from jax.experimental.pallas import tpu as pltpu


def _rmsnorm_kernel(x_ref, w_ref, o_ref, *, eps):
    # Upcast to float32 for the variance computation (matches .to(torch.float32)).
    # NOTE: with a cdiv grid the last block may be partial; padded/garbage rows
    # flow through x*x and rsqrt (possible inf/NaN) but each row is independent
    # and Pallas masks the out-of-range rows on writeback, so they never reach
    # HBM.  Keep this kernel free of cross-row reductions / scratch writes.
    x = x_ref[...].astype(jnp.float32)
    variance = jnp.mean(x * x, axis=-1, keepdims=True)
    normed = x * jax.lax.rsqrt(variance + eps)
    # Cast back to the input dtype, then multiply by the weight, matching
    # `self.weight * hidden_states.to(input_dtype)` promotion rules.
    normed_in_dtype = normed.astype(x_ref.dtype)
    o_ref[...] = (w_ref[...] * normed_in_dtype).astype(o_ref.dtype)


# Keep at least this many grid steps when the row count allows it, so the
# "parallel" row axis can shard across both TensorCores on v7x (single-block
# grids leave one TC idle there; v5e/v6e have 1 TC and are unaffected).
_MIN_GRID_STEPS = 4

# Upper cap on rows per tile (amortizes the ~0.35us per-step overhead many
# times over at any realistic hidden size; larger tiles give no further gain).
_MAX_ROW_TILE = 2048


def _vmem_budgets():
    """Return (tile_data_budget_bytes, scoped_vmem_limit_bytes) per generation."""
    try:
        cap = pltpu.get_tpu_info().vmem_capacity_bytes
    except Exception:
        cap = 64 << 20  # unknown part: assume the smallest (v7x-sized) VMEM
    if cap >= (128 << 20):
        # v5e / v6e: 128 MiB physical VMEM — bigger tiles, higher scoped limit.
        return 40 << 20, 96 << 20
    # v7x: 64 MiB physical VMEM per TensorCore — stay well clear of it.
    return 20 << 20, 48 << 20


def _sublane_multiple(*dtypes):
    """Minimum row-tile multiple so every dtype in play stays tile-aligned."""
    m = 8
    for d in dtypes:
        m = max(m, 32 // jnp.dtype(d).itemsize)  # f32 -> 8, bf16 -> 16, int8 -> 32
    return m


def _per_row_vmem_bytes(hidden, x_bytes, out_bytes):
    # Double-buffered input tile + double-buffered output tile + two f32
    # temporaries (the upcast x_f32 and the normed f32 value are both live
    # across the reduction).
    return hidden * (2 * x_bytes + 2 * out_bytes + 2 * 4)


def _pick_row_tile(rows, hidden, x_bytes, out_bytes, sublane, tile_budget):
    """Largest row tile that fits the VMEM budget, with a >=4-step grid cap."""
    per_row = _per_row_vmem_bytes(hidden, x_bytes, out_bytes)
    t = max(sublane, tile_budget // per_row)
    t = min(t, _MAX_ROW_TILE)
    # Don't let the grid collapse to 1-2 steps when the problem is big enough:
    # v7x's two TensorCores only get work via multiple "parallel" grid steps.
    per_step_cap = pl.cdiv(rows, _MIN_GRID_STEPS)
    if per_step_cap >= sublane:
        t = min(t, per_step_cap)
    # Round down to the sublane multiple required by the dtypes in play.
    t = max(sublane, (t // sublane) * sublane)
    if t >= rows:
        # Single block covering all rows; a full-extent block dim is always legal.
        return rows
    return t


def rmsnorm(hidden_states, weight, eps=1e-6, *, row_tile=None, out_dtype=None):
    """hidden_states: (..., hidden); weight: (hidden,).

    row_tile:  override the auto-tuned rows-per-grid-step.  Must be a multiple
               of the sublane requirement for the dtypes in play (8 for f32,
               16 for bf16) or >= the number of rows; oversized values are
               clamped to the VMEM budget.
    out_dtype: override the output dtype.  Default follows torch promotion
               (weight_dtype x input_dtype).  Pass jnp.bfloat16 to halve the
               writeback bytes when the consumer accepts bf16 — the single
               biggest perf lever for bf16 activations with an f32 weight.
    """
    orig_shape = hidden_states.shape
    hidden = orig_shape[-1]
    x2d = hidden_states.reshape(-1, hidden)
    rows = x2d.shape[0]

    if out_dtype is None:
        # torch promotion: weight * hidden_states.to(input_dtype)
        out_dtype = jnp.result_type(weight.dtype, hidden_states.dtype)

    x_bytes = jnp.dtype(hidden_states.dtype).itemsize
    o_bytes = jnp.dtype(out_dtype).itemsize
    sublane = _sublane_multiple(hidden_states.dtype, out_dtype)
    tile_budget, vmem_limit = _vmem_budgets()

    if row_tile is None:
        row_tile = _pick_row_tile(rows, hidden, x_bytes, o_bytes, sublane, tile_budget)
    else:
        if row_tile >= rows:
            row_tile = rows  # full-extent block is always legal
        elif row_tile % sublane != 0:
            raise ValueError(
                f"row_tile={row_tile} must be a multiple of {sublane} for dtypes "
                f"({hidden_states.dtype}, {out_dtype}) or >= rows={rows}")
        else:
            # Clamp an oversized user tile to the generation-aware VMEM budget.
            per_row = _per_row_vmem_bytes(hidden, x_bytes, o_bytes)
            max_rows = max(sublane, (tile_budget // per_row // sublane) * sublane)
            row_tile = min(row_tile, max_rows)

    # Weight presented as a (1, hidden) row so it broadcasts inside the kernel.
    w2d = weight.reshape(1, hidden)

    # cdiv grid: partial last block is masked on writeback, no divisibility needed.
    grid = (pl.cdiv(rows, row_tile),)

    # NOTE: production hidden sizes (4096, 8192, ...) are multiples of 128 and
    # stay lane-dense; tiny hidden (like the 32 in the smoke test) is legal
    # because the block covers the full hidden dim, just not lane-efficient.
    # TODO(synk): if an xprof trace on v7x shows exposed DMA gaps between grid
    # steps, sweep pipeline_mode=pl.Buffered(3) on the x/out BlockSpecs (only
    # if the VMEM budget leaves room for the third buffer).

    kernel = lambda x_ref, w_ref, o_ref: _rmsnorm_kernel(x_ref, w_ref, o_ref, eps=eps)

    out2d = pl.pallas_call(
        kernel,
        out_shape=jax.ShapeDtypeStruct((rows, hidden), out_dtype),
        grid_spec=pltpu.PrefetchScalarGridSpec(
            num_scalar_prefetch=0,
            grid=grid,
            in_specs=[
                pl.BlockSpec((row_tile, hidden), lambda i: (i, 0)),
                pl.BlockSpec((1, hidden), lambda i: (0, 0)),
            ],
            out_specs=pl.BlockSpec((row_tile, hidden), lambda i: (i, 0)),
        ),
        compiler_params=pltpu.CompilerParams(
            dimension_semantics=("parallel",),
            # Explicit scoped VMEM limit: without it v5e falls back to 16 MiB
            # and the auto-picked tiles won't fit.
            vmem_limit_bytes=vmem_limit,
        ),
    )(x2d, w2d)

    return out2d.reshape(orig_shape[:-1] + (hidden,))


def rmsnorm_reference(hidden_states, weight, eps=1e-6):
    input_dtype = hidden_states.dtype
    x = hidden_states.astype(jnp.float32)
    variance = jnp.mean(x * x, axis=-1, keepdims=True)
    x = x * jax.lax.rsqrt(variance + eps)
    return weight * x.astype(input_dtype)


if __name__ == "__main__":
    eps = 1e-6
    key = jax.random.PRNGKey(0)
    k1, k2, k3 = jax.random.split(key, 3)

    # --- Test 1: small f32 shape matching the module spec ---
    batch, seq, hidden = 2, 8, 32
    x = jax.random.normal(k1, (batch, seq, hidden), dtype=jnp.float32)
    # Deterministic param init per module __init__: torch.full((hidden_size,), 0.4)
    weight = jnp.full((hidden,), 0.4, dtype=jnp.float32)

    out = jax.block_until_ready(rmsnorm(x, weight, eps))
    ref = rmsnorm_reference(x, weight, eps)
    assert out.shape == ref.shape and out.dtype == ref.dtype
    assert jnp.allclose(out, ref, atol=1e-5, rtol=1e-5)

    # --- Test 2: bf16 input, f32 weight (torch-promotion f32 output),
    #             lane-dense hidden, non-divisible row count, explicit row_tile
    #             exercising the cdiv/partial-block path ---
    b2, s2, h2 = 3, 37, 256  # rows = 111, not a multiple of the tile
    xb = jax.random.normal(k2, (b2, s2, h2), dtype=jnp.float32).astype(jnp.bfloat16)
    wb = jnp.full((h2,), 0.4, dtype=jnp.float32)

    out_b = jax.block_until_ready(rmsnorm(xb, wb, eps, row_tile=32))
    ref_b = rmsnorm_reference(xb, wb, eps)
    assert out_b.shape == ref_b.shape and out_b.dtype == ref_b.dtype
    assert jnp.allclose(out_b.astype(jnp.float32), ref_b.astype(jnp.float32),
                        atol=1e-2, rtol=1e-2)

    # --- Test 3: bf16 writeback override (the "bytes moved" lever), auto tile,
    #             multi-step grid (>= _MIN_GRID_STEPS) exercising the v7x path ---
    b3, s3, h3 = 4, 40, 128  # rows = 160
    xc = jax.random.normal(k3, (b3, s3, h3), dtype=jnp.float32).astype(jnp.bfloat16)
    wc = jnp.full((h3,), 0.4, dtype=jnp.float32)

    out_c = jax.block_until_ready(rmsnorm(xc, wc, eps, out_dtype=jnp.bfloat16))
    ref_c = rmsnorm_reference(xc, wc, eps).astype(jnp.bfloat16)
    assert out_c.shape == ref_c.shape and out_c.dtype == jnp.bfloat16
    assert jnp.allclose(out_c.astype(jnp.float32), ref_c.astype(jnp.float32),
                        atol=2e-2, rtol=2e-2)

    print("KERNEL_OK")
</pallas_src>

<mosaic_0001>
module attributes {stable_mosaic.version = 11 : i64} {
  func.func @_lambda_(%arg0: i32, %arg1: memref<16x32xf32, #tpu.memory_space<vmem>>, %arg2: memref<1x32xf32, #tpu.memory_space<vmem>>, %arg3: memref<16x32xf32, #tpu.memory_space<vmem>>) attributes {dimension_semantics = [#tpu.dimension_semantics<parallel>], iteration_bounds = array<i64: 1>, scalar_prefetch = 0 : i64, scratch_operands = 0 : i64, tpu.core_type = #tpu.core_type<tc>, window_params = [{transform_indices = @transform_0, window_bounds = array<i64: 16, 32>}, {pipeline_mode = #tpu.pipeline_mode<synchronous>, transform_indices = @transform_1, window_bounds = array<i64: 1, 32>}, {transform_indices = @transform_2, window_bounds = array<i64: 16, 32>}]} {
    %c0 = arith.constant 0 : index
    %c0_0 = arith.constant 0 : index
    %0 = vector.load %arg1[%c0, %c0_0] : memref<16x32xf32, #tpu.memory_space<vmem>>, vector<16x32xf32>
    %1 = arith.mulf %0, %0 : vector<16x32xf32>
    %cst = arith.constant dense<0.000000e+00> : vector<16xf32>
    %2 = vector.multi_reduction <add>, %1, %cst [1] : vector<16x32xf32> to vector<16xf32>
    %3 = vector.shape_cast %2 : vector<16xf32> to vector<16x1xf32>
    %cst_1 = arith.constant 3.200000e+01 : f32
    %4 = vector.broadcast %cst_1 : f32 to vector<16x1xf32>
    %5 = arith.divf %3, %4 : vector<16x1xf32>
    %cst_2 = arith.constant 9.99999997E-7 : f32
    %6 = vector.broadcast %cst_2 : f32 to vector<16x1xf32>
    %7 = arith.addf %5, %6 : vector<16x1xf32>
    %8 = math.rsqrt %7 : vector<16x1xf32>
    %9 = vector.broadcast %8 : vector<16x1xf32> to vector<16x32xf32>
    %10 = arith.mulf %0, %9 : vector<16x32xf32>
    %c0_3 = arith.constant 0 : index
    %c0_4 = arith.constant 0 : index
    %11 = vector.load %arg2[%c0_3, %c0_4] : memref<1x32xf32, #tpu.memory_space<vmem>>, vector<1x32xf32>
    %12 = vector.broadcast %11 : vector<1x32xf32> to vector<16x32xf32>
    %13 = arith.mulf %12, %10 : vector<16x32xf32>
    %c0_5 = arith.constant 0 : index
    %c0_6 = arith.constant 0 : index
    %14 = vector.load %arg3[%c0_5, %c0_6] : memref<16x32xf32, #tpu.memory_space<vmem>>, vector<16x32xf32>
    tpu.vector_store %arg3[%c0_5, %c0_6], %13 {strides = array<i32>} : memref<16x32xf32, #tpu.memory_space<vmem>>, vector<16x32xf32>,
    return
  }
  func.func @transform_0(%arg0: i32) -> (i32, i32) {
    %c0_i32 = arith.constant 0 : i32
    %c0_i32_0 = arith.constant 0 : i32
    return %arg0, %c0_i32 : i32, i32
  }
  func.func @transform_1(%arg0: i32) -> (i32, i32) {
    %c0_i32 = arith.constant 0 : i32
    %c0_i32_0 = arith.constant 0 : i32
    %c0_i32_1 = arith.constant 0 : i32
    return %c0_i32, %c0_i32_0 : i32, i32
  }
  func.func @transform_2(%arg0: i32) -> (i32, i32) {
    %c0_i32 = arith.constant 0 : i32
    %c0_i32_0 = arith.constant 0 : i32
    return %arg0, %c0_i32 : i32, i32
  }
}

</mosaic_0001>

<bundles_post_ra>
// kernel: tpu_custom_call.1
= control target key start
LH: loop header
LB: loop body
LE: loop exit
PB: predicated region body
PF: predicated region fallthrough
CT: control target
= control target key end

     0   :  { %7 = vsyncpa [#allocation3], 0  ;;  %s165_s0 = inlined_call_operand.hbm [shape: f32[16,32], index: 0, kind: input, shape index: {}]   ;;  %s166_s1 = inlined_call_operand.vmem [shape: f32[1,32], index: 1, kind: input, shape index: {}]   ;;  %s167_s2 = inlined_call_operand.hbm [shape: f32[16,32], index: 2, kind: output, shape index: {}]  }
   0x1   :  { %8 = vsyncpa [#allocation4], 0  ;;  %s127_s9 = smov [#allocation2]  }
   0x2   :  { %s14_s10 = sshll.u32 %s127_s9, 4  ;;  %s15_s10 = int_to_ptr.vmem [resolvable:$true] %s14_s10 }
   0x3   :  { %s91_s11 = scalar_lea.vmem %s15_s10, 256  ;;  %p96_p1 = scmp.lt.s32.totalorder %s15_s10, %s15_s10 }
   0x4   :  { %p92_p0 = scmp.ne.s32.totalorder %s15_s10, %s91_s11  ;;  %p97_p2 = scmp.lt.s32.totalorder %s91_s11, %s91_s11 }
   0x6   :  { %p98_p3 = por %p97_p2, %p96_p1 }
   0x8   :  { %p99_p4 = pnand %p98_p3, %p92_p0 }
   0xa   :  { %102 = shalt.err (!%p99_p4)
}
   0xb   :  { %s128_s12 = smov 128   ;;  %s129_s13 = smov 8  }
   0xc   :  { %20 = dma.hbm_to_vmem [thread:$0]  %s165_s0, 256, %s15_s10, [#allocation3], %s128_s12, %s128_s12, %s129_s13  }
   0xd   :  { %123 = dma.done.wait [#allocation3], 256  }
   0xe   :  { %124 = vsyncadd [#allocation3], 4294967040  ;;  %v26_v0 = vld [vmem:[#allocation2] sm:$0xff]  ;;  %vm30_vm0 = vcmask 261120   ;;  %v27_v1 = vld [vmem:[#allocation2 + $0x8] sm:$0xff]  ;;  %s130_s17 = smov [#allocation5]  }
   0xf   :  { %v28_v2 = vmul.f32 %v26_v0, %v26_v0  ;;  %v29_v3 = vmul.f32 %v27_v1, %v27_v1  ;;  %v74_v13 = vld [vmem:[%s166_s1] ss:$0 sm:$0xff]  ;;  %s62_s18 = sshll.u32 %s130_s17, 4  ;;  %s63_s18 = int_to_ptr.vmem [resolvable:$true] %s62_s18 }
  0x10   :  { %s103_s19 = scalar_lea.vmem %s63_s18, 256  ;;  %p108_p6 = scmp.lt.s32.totalorder %s63_s18, %s63_s18 }
  0x11   :  { %v31_v4 = vsel %vm30_vm0, %v28_v2, 0.0  ;;  %v34_v5 = vsel %vm30_vm0, %v29_v3, 0.0  ;;  %p104_p5 = scmp.ne.s32.totalorder %s63_s18, %s103_s19  ;;  %p109_p7 = scmp.lt.s32.totalorder %s103_s19, %s103_s19 }
  0x12   :  { %32 = vadd.xlane.f32.xlu0 %v31_v4 }
  0x13   :  { %p110_p8 = por %p109_p7, %p108_p6 }
  0x15   :  { %p111_p9 = pnand %p110_p8, %p104_p5 }
  0x16   :  { %35 = vadd.xlane.f32.xlu0 %v34_v5 }
  0x9b   :  { %v33_v6 = vpop.xlane.xlu0 %32 }
  0x9c   :  { %v38_v7 = vmul.f32 0.03125, %v33_v6 }
  0x9e   :  { %v40_v8 = vadd.f32 1e-06, %v38_v7 }
  0x9f   :  { %v36_v9 = vpop.xlane.xlu0 %35 }
  0xa0   :  { %79 = vrsqrt.f32 %v40_v8  ;;  %v39_v10 = vmul.f32 0.03125, %v36_v9 }
  0xa2   :  { %v41_v11 = vadd.f32 1e-06, %v39_v10 }
  0xa4   :  { %81 = vrsqrt.f32 %v41_v11 }
  0xad   :  { %v80_v12 = vpop.eup %79 }
  0xae   :  { %v44_v14 = vmul.f32 %v80_v12, %v26_v0 }
  0xb0   :  { %v53_v15 = vmul.f32 %v74_v13, %v44_v14 }
  0xb1   :  { %v82_v16 = vpop.eup %81 }
  0xb2   :  { %v45_v17 = vmul.f32 %v82_v16, %v27_v1  ;;  %55 = vst.msk [vmem:[#allocation5] sm:$0xff] %vm30_vm0, %v53_v15 }
  0xb4   :  { %v54_v18 = vmul.f32 %v74_v13, %v45_v17 }
  0xb6   :  { %56 = vst.msk [vmem:[#allocation5 + $0x8] sm:$0xff] %vm30_vm0, %v54_v18 }
  0xb7   :  { %114 = shalt.err (!%p111_p9)
}
  0xb8   :  { %68 = dma.vmem_to_hbm [thread:$0]  %s63_s18, 256, %s167_s2, [#allocation4], %s128_s12, %s128_s12, %s129_s13  }
  0xb9   :  { %125 = dma.done.wait [#allocation4], 256  }
  0xba   :  { %126 = vsyncadd [#allocation4], 4294967040 }
  0xbb   :  { %72 = vsyncpa [#allocation3], 1 }
  0xbc   :  { %73 = vsyncpa [#allocation4], 1 }

</bundles_post_ra>
